<compile_context>
chip_gen: v7x
topology: tpu7x:2x2x1
jax: 0.10.0
libtpu: 0.0.40
codegen_flags: <defaults>
</compile_context>

<pallas_src>
import functools

import jax
import jax.numpy as jnp
from jax.experimental import pallas as pl
from jax.experimental.pallas import tpu as pltpu


# ----------------------------- Pallas kernel ------------------------------- #
def _predict_decoder_kernel(x_ref, w1_ref, bn_ref, w2_ref, b2_ref, out_ref,
                            h_acc, *, b_real, eps, mxu_dtype):
    """Fused fc1 -> BatchNorm1d (batch stats) -> ReLU -> fc2.

    Grid axis 0 tiles the in_dim reduction; the (Bp, Hp) fc1 activation is
    accumulated in f32 VMEM scratch and the BN + ReLU + fc2 epilogue runs once
    on the final grid step.
    """
    k = pl.program_id(0)

    @pl.when(k == 0)
    def _():
        h_acc[...] = jnp.zeros_like(h_acc)

    # fc1 partial product on the MXU (bf16 in / f32 accumulate by default).
    h_acc[...] += jnp.dot(x_ref[...], w1_ref[...],
                          preferred_element_type=jnp.float32)

    @pl.when(k == pl.num_programs(0) - 1)
    def _():
        h = h_acc[...]                                          # (Bp, Hp) f32

        # Batch statistics (biased variance — PyTorch training-mode semantics).
        # Padded batch rows contribute exact zeros (zero-padded x, no fc1 bias),
        # so no row mask is needed; divide by the real batch size only.
        inv_n = jnp.float32(1.0 / b_real)
        sum_h = jnp.sum(h, axis=0, keepdims=True)               # (1, Hp)
        sum_sq = jnp.sum(h * h, axis=0, keepdims=True)          # (1, Hp)
        mean = sum_h * inv_n
        var = jnp.maximum(sum_sq * inv_n - mean * mean, 0.0)
        inv_std = jax.lax.rsqrt(var + eps)                      # EUP

        # Fold BN affine into one FMA on the (Bp, Hp) tensor.
        bn = bn_ref[...]                                        # (2, Hp) f32
        gamma = bn[0:1, :]
        beta = bn[1:2, :]
        scale = gamma * inv_std                                 # (1, Hp)
        shift = beta - mean * scale                             # (1, Hp)
        a = jnp.maximum(h * scale + shift, 0.0)                 # ReLU

        # fc2 on the MXU.
        y = jnp.dot(a.astype(mxu_dtype), w2_ref[...],
                    preferred_element_type=jnp.float32) + b2_ref[...]
        out_ref[...] = y.astype(out_ref.dtype)


# ------------------------------ packing / wrapper --------------------------- #
def _round_up(n, m):
    return ((n + m - 1) // m) * m


def _pad2(x, shape):
    pr, pc = shape[0] - x.shape[0], shape[1] - x.shape[1]
    if pr == 0 and pc == 0:
        return x
    return jnp.pad(x, ((0, pr), (0, pc)))


def pack_predict_decoder_params(params, mxu_dtype=jnp.bfloat16):
    """One-time packing (transpose + pad + cast) of PyTorch-layout params.

    params = (w1, b1, gamma, beta, w2, b2) with PyTorch layouts:
      w1 (64, in_dim), b1 (64,), gamma/beta (64,), w2 (out_dim, 64), b2 (out_dim,).
    b1 is dropped: a constant per-feature bias is exactly cancelled by the
    batch-mean subtraction of BatchNorm in training mode.
    """
    w1, _b1, gamma, beta, w2, b2 = params
    H, Din = w1.shape
    O = w2.shape[0]
    Dp, Hp, Op = _round_up(Din, 128), _round_up(H, 128), _round_up(O, 128)

    w1p = _pad2(jnp.transpose(w1), (Dp, Hp)).astype(mxu_dtype)          # (Dp, Hp)
    bnp = _pad2(jnp.stack([gamma, beta]).astype(jnp.float32), (2, Hp))  # (2, Hp)
    w2p = _pad2(jnp.transpose(w2), (Hp, Op)).astype(mxu_dtype)          # (Hp, Op)
    b2p = _pad2(b2.astype(jnp.float32)[None, :], (1, Op))               # (1, Op)
    return dict(w1=w1p, bn=bnp, w2=w2p, b2=b2p,
                dims=(Din, H, O), mxu_dtype=mxu_dtype)


def predict_decoder_forward(x, packed, eps=1e-3, tk_target=512):
    """x: (B, in_dim) -> (B, out_dim) using pre-packed params."""
    Din, H, O = packed["dims"]
    mxu_dtype = packed["mxu_dtype"]
    w1p, bnp, w2p, b2p = packed["w1"], packed["bn"], packed["w2"], packed["b2"]
    Dp, Hp = w1p.shape
    Op = w2p.shape[1]

    B = x.shape[0]
    Bp = _round_up(B, 8)
    # TODO(synk): for B >= 128, tile/round the batch to the MXU-native M (128/256)
    # and add a 'parallel' batch grid axis (two-pass BN stats) to use both v7x TCs.

    xp = _pad2(x.astype(jnp.float32), (Bp, Dp)).astype(mxu_dtype)

    # Tile the in_dim reduction: bounds VMEM and lets the x/w1 DMAs pipeline.
    tk = min(_round_up(tk_target, 128), Dp)
    while Dp % tk != 0:
        tk -= 128

    kernel = functools.partial(_predict_decoder_kernel,
                               b_real=B, eps=eps, mxu_dtype=mxu_dtype)

    out_padded = pl.pallas_call(
        kernel,
        out_shape=jax.ShapeDtypeStruct((Bp, Op), jnp.float32),
        grid_spec=pltpu.PrefetchScalarGridSpec(
            num_scalar_prefetch=0,
            grid=(Dp // tk,),
            in_specs=[
                pl.BlockSpec((Bp, tk), lambda k: (0, k)),     # x tile
                pl.BlockSpec((tk, Hp), lambda k: (k, 0)),     # w1 tile
                pl.BlockSpec((2, Hp), lambda k: (0, 0)),      # gamma/beta packed
                pl.BlockSpec((Hp, Op), lambda k: (0, 0)),     # w2
                pl.BlockSpec((1, Op), lambda k: (0, 0)),      # b2
            ],
            out_specs=pl.BlockSpec((Bp, Op), lambda k: (0, 0)),
            scratch_shapes=[pltpu.VMEM((Bp, Hp), jnp.float32)],
        ),
        compiler_params=pltpu.CompilerParams(
            dimension_semantics=("arbitrary",)),
    )(xp, w1p, bnp, w2p, b2p)

    return out_padded[:B, :O]


# ------------------------- parameter initialization ------------------------ #
def init_predict_decoder_params(key, in_dim, out_dim, hidden=64):
    """PyTorch-style init: Linear weights/biases ~ U(-1/sqrt(fan_in), 1/sqrt(fan_in));
    BN affine params randomized (instead of 1/0) so the affine path is exercised."""
    k1, k2, k3, k4, k5, k6 = jax.random.split(key, 6)
    bnd1 = 1.0 / jnp.sqrt(jnp.float32(in_dim))
    bnd2 = 1.0 / jnp.sqrt(jnp.float32(hidden))
    w1 = jax.random.uniform(k1, (hidden, in_dim), jnp.float32, -bnd1, bnd1)
    b1 = jax.random.uniform(k2, (hidden,), jnp.float32, -bnd1, bnd1)
    gamma = jax.random.uniform(k3, (hidden,), jnp.float32, 0.5, 1.5)
    beta = jax.random.uniform(k4, (hidden,), jnp.float32, -0.5, 0.5)
    w2 = jax.random.uniform(k5, (out_dim, hidden), jnp.float32, -bnd2, bnd2)
    b2 = jax.random.uniform(k6, (out_dim,), jnp.float32, -bnd2, bnd2)
    return (w1, b1, gamma, beta, w2, b2)


# ------------------------- pure-JAX reference check ------------------------ #
def _reference_forward(x, params, eps=1e-3):
    w1, b1, gamma, beta, w2, b2 = params
    h = x @ w1.T + b1
    mean = jnp.mean(h, axis=0, keepdims=True)
    var = jnp.mean((h - mean) ** 2, axis=0, keepdims=True)     # biased var (train mode)
    h_norm = (h - mean) / jnp.sqrt(var + eps) * gamma + beta
    a = jnp.maximum(h_norm, 0.0)
    return a @ w2.T + b2


if __name__ == "__main__":
    B, in_dim, out_dim = 4, 16, 32

    key = jax.random.PRNGKey(0)
    key, kx, kp = jax.random.split(key, 3)
    x = jax.random.normal(kx, (B, in_dim), jnp.float32)
    params = init_predict_decoder_params(kp, in_dim, out_dim)
    ref = _reference_forward(x, params)

    # f32 MXU path: tight tolerance check of the fused kernel structure.
    packed_f32 = pack_predict_decoder_params(params, mxu_dtype=jnp.float32)
    out_f32 = predict_decoder_forward(x, packed_f32)
    jax.block_until_ready(out_f32)
    assert out_f32.shape == (B, out_dim)
    assert jnp.allclose(out_f32, ref, atol=2e-4, rtol=2e-4), (
        float(jnp.max(jnp.abs(out_f32 - ref))))

    # bf16 MXU path (default / recommended): looser tolerance for bf16 operands.
    packed_bf16 = pack_predict_decoder_params(params, mxu_dtype=jnp.bfloat16)
    out_bf16 = predict_decoder_forward(x, packed_bf16)
    jax.block_until_ready(out_bf16)
    assert out_bf16.shape == (B, out_dim)
    assert jnp.allclose(out_bf16, ref, atol=5e-2, rtol=5e-2), (
        float(jnp.max(jnp.abs(out_bf16 - ref))))

    print("KERNEL_OK")
</pallas_src>

<mosaic_0001>
module attributes {stable_mosaic.version = 11 : i64} {
  func.func @_predict_decoder_kernel(%arg0: i32, %arg1: memref<8x128xf32, #tpu.memory_space<vmem>>, %arg2: memref<128x128xf32, #tpu.memory_space<vmem>>, %arg3: memref<2x128xf32, #tpu.memory_space<vmem>>, %arg4: memref<128x128xf32, #tpu.memory_space<vmem>>, %arg5: memref<1x128xf32, #tpu.memory_space<vmem>>, %arg6: memref<8x128xf32, #tpu.memory_space<vmem>>, %arg7: memref<8x128xf32, #tpu.memory_space<vmem>>) attributes {dimension_semantics = [#tpu.dimension_semantics<arbitrary>], iteration_bounds = array<i64: 1>, scalar_prefetch = 0 : i64, scratch_operands = 1 : i64, tpu.core_type = #tpu.core_type<tc>, window_params = [{transform_indices = @transform_0, window_bounds = array<i64: 8, 128>}, {transform_indices = @transform_1, window_bounds = array<i64: 128, 128>}, {pipeline_mode = #tpu.pipeline_mode<synchronous>, transform_indices = @transform_2, window_bounds = array<i64: 2, 128>}, {pipeline_mode = #tpu.pipeline_mode<synchronous>, transform_indices = @transform_3, window_bounds = array<i64: 128, 128>}, {pipeline_mode = #tpu.pipeline_mode<synchronous>, transform_indices = @transform_4, window_bounds = array<i64: 1, 128>}, {pipeline_mode = #tpu.pipeline_mode<synchronous>, transform_indices = @transform_5, window_bounds = array<i64: 8, 128>}]} {
    %c0_i32 = arith.constant 0 : i32
    %0 = arith.cmpi eq, %arg0, %c0_i32 : i32
    %1 = arith.extui %0 : i1 to i32
    %c0_i32_0 = arith.constant 0 : i32
    %2 = arith.cmpi ne, %1, %c0_i32_0 : i32
    scf.if %2 {
      %cst_10 = arith.constant 0.000000e+00 : f32
      %12 = vector.broadcast %cst_10 : f32 to vector<8x128xf32>
      %c0_11 = arith.constant 0 : index
      %c0_12 = arith.constant 0 : index
      %13 = vector.load %arg7[%c0_11, %c0_12] : memref<8x128xf32, #tpu.memory_space<vmem>>, vector<8x128xf32>
      tpu.vector_store %arg7[%c0_11, %c0_12], %12 {strides = array<i32>} : memref<8x128xf32, #tpu.memory_space<vmem>>, vector<8x128xf32>,
    } else {
    }
    %c0 = arith.constant 0 : index
    %c0_1 = arith.constant 0 : index
    %3 = vector.load %arg7[%c0, %c0_1] : memref<8x128xf32, #tpu.memory_space<vmem>>, vector<8x128xf32>
    %c0_2 = arith.constant 0 : index
    %c0_3 = arith.constant 0 : index
    %4 = vector.load %arg1[%c0_2, %c0_3] : memref<8x128xf32, #tpu.memory_space<vmem>>, vector<8x128xf32>
    %c0_4 = arith.constant 0 : index
    %c0_5 = arith.constant 0 : index
    %5 = vector.load %arg2[%c0_4, %c0_5] : memref<128x128xf32, #tpu.memory_space<vmem>>, vector<128x128xf32>
    %cst = arith.constant dense<0.000000e+00> : vector<8x128xf32>
    %6 = tpu.matmul %4, %5, %cst {dimension_numbers = #tpu.dot_dimension_numbers<[1], [0], [0], [1], [0, 0, 1, 1], [], []>} : vector<8x128xf32>, vector<128x128xf32>, vector<8x128xf32> -> vector<8x128xf32>
    %7 = arith.addf %3, %6 : vector<8x128xf32>
    %c0_6 = arith.constant 0 : index
    %c0_7 = arith.constant 0 : index
    %8 = vector.load %arg7[%c0_6, %c0_7] : memref<8x128xf32, #tpu.memory_space<vmem>>, vector<8x128xf32>
    tpu.vector_store %arg7[%c0_6, %c0_7], %7 {strides = array<i32>} : memref<8x128xf32, #tpu.memory_space<vmem>>, vector<8x128xf32>,
    %c0_i32_8 = arith.constant 0 : i32
    %9 = arith.cmpi eq, %arg0, %c0_i32_8 : i32
    %10 = arith.extui %9 : i1 to i32
    %c0_i32_9 = arith.constant 0 : i32
    %11 = arith.cmpi ne, %10, %c0_i32_9 : i32
    scf.if %11 {
      %c0_10 = arith.constant 0 : index
      %c0_11 = arith.constant 0 : index
      %12 = vector.load %arg7[%c0_10, %c0_11] : memref<8x128xf32, #tpu.memory_space<vmem>>, vector<8x128xf32>
      %cst_12 = arith.constant dense<0.000000e+00> : vector<128xf32>
      %13 = vector.multi_reduction <add>, %12, %cst_12 [0] : vector<8x128xf32> to vector<128xf32>
      %14 = vector.shape_cast %13 : vector<128xf32> to vector<1x128xf32>
      %15 = arith.mulf %12, %12 : vector<8x128xf32>
      %cst_13 = arith.constant dense<0.000000e+00> : vector<128xf32>
      %16 = vector.multi_reduction <add>, %15, %cst_13 [0] : vector<8x128xf32> to vector<128xf32>
      %17 = vector.shape_cast %16 : vector<128xf32> to vector<1x128xf32>
      %cst_14 = arith.constant 2.500000e-01 : f32
      %18 = vector.broadcast %cst_14 : f32 to vector<1x128xf32>
      %19 = arith.mulf %14, %18 : vector<1x128xf32>
      %cst_15 = arith.constant 2.500000e-01 : f32
      %20 = vector.broadcast %cst_15 : f32 to vector<1x128xf32>
      %21 = arith.mulf %17, %20 : vector<1x128xf32>
      %22 = arith.mulf %19, %19 : vector<1x128xf32>
      %23 = arith.subf %21, %22 : vector<1x128xf32>
      %cst_16 = arith.constant 0.000000e+00 : f32
      %24 = vector.broadcast %cst_16 : f32 to vector<1x128xf32>
      %25 = arith.maximumf %23, %24 : vector<1x128xf32>
      %cst_17 = arith.constant 1.000000e-03 : f32
      %26 = vector.broadcast %cst_17 : f32 to vector<1x128xf32>
      %27 = arith.addf %25, %26 : vector<1x128xf32>
      %28 = math.rsqrt %27 : vector<1x128xf32>
      %c0_18 = arith.constant 0 : index
      %c0_19 = arith.constant 0 : index
      %29 = vector.load %arg3[%c0_18, %c0_19] : memref<2x128xf32, #tpu.memory_space<vmem>>, vector<2x128xf32>
      %30 = vector.extract_strided_slice %29 {offsets = [0, 0], sizes = [1, 128], strides = [1, 1]} : vector<2x128xf32> to vector<1x128xf32>
      %31 = vector.extract_strided_slice %29 {offsets = [1, 0], sizes = [1, 128], strides = [1, 1]} : vector<2x128xf32> to vector<1x128xf32>
      %32 = arith.mulf %30, %28 : vector<1x128xf32>
      %33 = arith.mulf %19, %32 : vector<1x128xf32>
      %34 = arith.subf %31, %33 : vector<1x128xf32>
      %35 = vector.broadcast %32 : vector<1x128xf32> to vector<8x128xf32>
      %36 = arith.mulf %12, %35 : vector<8x128xf32>
      %37 = vector.broadcast %34 : vector<1x128xf32> to vector<8x128xf32>
      %38 = arith.addf %36, %37 : vector<8x128xf32>
      %cst_20 = arith.constant 0.000000e+00 : f32
      %39 = vector.broadcast %cst_20 : f32 to vector<8x128xf32>
      %40 = arith.maximumf %38, %39 : vector<8x128xf32>
      %c0_21 = arith.constant 0 : index
      %c0_22 = arith.constant 0 : index
      %41 = vector.load %arg4[%c0_21, %c0_22] : memref<128x128xf32, #tpu.memory_space<vmem>>, vector<128x128xf32>
      %cst_23 = arith.constant dense<0.000000e+00> : vector<8x128xf32>
      %42 = tpu.matmul %40, %41, %cst_23 {dimension_numbers = #tpu.dot_dimension_numbers<[1], [0], [0], [1], [0, 0, 1, 1], [], []>} : vector<8x128xf32>, vector<128x128xf32>, vector<8x128xf32> -> vector<8x128xf32>
      %c0_24 = arith.constant 0 : index
      %c0_25 = arith.constant 0 : index
      %43 = vector.load %arg5[%c0_24, %c0_25] : memref<1x128xf32, #tpu.memory_space<vmem>>, vector<1x128xf32>
      %44 = vector.broadcast %43 : vector<1x128xf32> to vector<8x128xf32>
      %45 = arith.addf %42, %44 : vector<8x128xf32>
      %c0_26 = arith.constant 0 : index
      %c0_27 = arith.constant 0 : index
      %46 = vector.load %arg6[%c0_26, %c0_27] : memref<8x128xf32, #tpu.memory_space<vmem>>, vector<8x128xf32>
      tpu.vector_store %arg6[%c0_26, %c0_27], %45 {strides = array<i32>} : memref<8x128xf32, #tpu.memory_space<vmem>>, vector<8x128xf32>,
    } else {
    }
    return
  }
  func.func @transform_0(%arg0: i32) -> (i32, i32) {
    %c0_i32 = arith.constant 0 : i32
    %c0_i32_0 = arith.constant 0 : i32
    return %c0_i32, %arg0 : i32, i32
  }
  func.func @transform_1(%arg0: i32) -> (i32, i32) {
    %c0_i32 = arith.constant 0 : i32
    %c0_i32_0 = arith.constant 0 : i32
    return %arg0, %c0_i32 : i32, i32
  }
  func.func @transform_2(%arg0: i32) -> (i32, i32) {
    %c0_i32 = arith.constant 0 : i32
    %c0_i32_0 = arith.constant 0 : i32
    %c0_i32_1 = arith.constant 0 : i32
    return %c0_i32, %c0_i32_0 : i32, i32
  }
  func.func @transform_3(%arg0: i32) -> (i32, i32) {
    %c0_i32 = arith.constant 0 : i32
    %c0_i32_0 = arith.constant 0 : i32
    %c0_i32_1 = arith.constant 0 : i32
    return %c0_i32, %c0_i32_0 : i32, i32
  }
  func.func @transform_4(%arg0: i32) -> (i32, i32) {
    %c0_i32 = arith.constant 0 : i32
    %c0_i32_0 = arith.constant 0 : i32
    %c0_i32_1 = arith.constant 0 : i32
    return %c0_i32, %c0_i32_0 : i32, i32
  }
  func.func @transform_5(%arg0: i32) -> (i32, i32) {
    %c0_i32 = arith.constant 0 : i32
    %c0_i32_0 = arith.constant 0 : i32
    %c0_i32_1 = arith.constant 0 : i32
    return %c0_i32, %c0_i32_0 : i32, i32
  }
}

</mosaic_0001>

<bundles_post_ra>
// kernel: tpu_custom_call.1
= control target key start
LH: loop header
LB: loop body
LE: loop exit
PB: predicated region body
PF: predicated region fallthrough
CT: control target
= control target key end

     0   :  { %10 = vsyncpa [#allocation4], 0  ;;  %s680_s0 = inlined_call_operand.hbm [shape: f32[8,128], index: 0, kind: input, shape index: {}]   ;;  %s681_s1 = inlined_call_operand.hbm [shape: f32[128,128], index: 1, kind: input, shape index: {}]   ;;  %s682_s2 = inlined_call_operand.vmem [shape: f32[2,128], index: 2, kind: input, shape index: {}]   ;;  %s683_s3 = inlined_call_operand.hbm [shape: f32[128,128], index: 3, kind: input, shape index: {}]   ;;  %s684_s4 = inlined_call_operand.vmem [shape: f32[1,128], index: 4, kind: input, shape index: {}]   ;;  %s685_s5 = inlined_call_operand.hbm [shape: f32[8,128], index: 5, kind: output, shape index: {}]  }
   0x1   :  { %11 = vsyncpa [#allocation7], 0 }
   0x2   :  { %12 = vsyncpa [#allocation5], 0  ;;  %s565_s18 = smov [#allocation6]   ;;  %s471_s22 = scalar_lea.hbm %s681_s1, 2048 }
   0x3   :  { %s28_s19 = sshll.u32 %s565_s18, 4  ;;  %p472_p0 = scmp.ne.s32.totalorder %s681_s1, %s471_s22  ;;  %s29_s19 = int_to_ptr.vmem [resolvable:$true] %s28_s19 }
   0x4   :  { %p475_p1 = scmp.lt.u32.totalorder %s471_s22, %s681_s1 }
   0x6   :  { %p477_p2 = pnand %p475_p1, %p472_p0 }
   0x8   :  { %480 = shalt.err (!%p477_p2)
}
   0x9   :  { %s481_s27 = scalar_lea.vmem %s29_s19, 2048  ;;  %p486_p4 = scmp.lt.s32.totalorder %s29_s19, %s29_s19 }
   0xa   :  { %p482_p3 = scmp.ne.s32.totalorder %s29_s19, %s481_s27  ;;  %p487_p5 = scmp.lt.s32.totalorder %s481_s27, %s481_s27 }
   0xc   :  { %p488_p6 = por %p487_p5, %p486_p4 }
   0xe   :  { %p489_p7 = pnand %p488_p6, %p482_p3 }
  0x10   :  { %492 = shalt.err (!%p489_p7)
}
  0x11   :  { %s566_s28 = smov 128   ;;  %s567_s29 = smov 8  }
  0x12   :  { %34 = dma.hbm_to_vmem [thread:$0]  %s681_s1, 2048, %s29_s19, [#allocation7], %s566_s28, %s566_s28, %s567_s29  }
  0x13   :  { %s568_s7 = smov [#allocation3]   ;;  %s569_s9 = smov [#allocation8]  }
  0x14   :  { %s19_s8 = sshll.u32 %s568_s7, 4  ;;  %s42_s10 = sshll.u32 %s569_s9, 4  ;;  %s20_s8 = int_to_ptr.vmem [resolvable:$true] %s19_s8  ;;  %s43_s10 = int_to_ptr.vmem [resolvable:$true] %s42_s10 }
  0x15   :  { %s493_s13 = scalar_lea.hbm %s680_s0, 128 }
  0x16   :  { %p494_p8 = scmp.ne.s32.totalorder %s680_s0, %s493_s13  ;;  %p497_p9 = scmp.lt.u32.totalorder %s493_s13, %s680_s0 }
  0x18   :  { %p499_p10 = pnand %p497_p9, %p494_p8 }
  0x1a   :  { %502 = shalt.err (!%p499_p10)
}
  0x1b   :  { %s503_s1 = scalar_lea.vmem %s20_s8, 128  ;;  %p508_p12 = scmp.lt.s32.totalorder %s20_s8, %s20_s8 }
  0x1c   :  { %p504_p11 = scmp.ne.s32.totalorder %s20_s8, %s503_s1  ;;  %p509_p13 = scmp.lt.s32.totalorder %s503_s1, %s503_s1 }
  0x1e   :  { %p510_p0 = por %p509_p13, %p508_p12 }
  0x20   :  { %p511_p1 = pnand %p510_p0, %p504_p11 }
  0x22   :  { %514 = shalt.err (!%p511_p1)
}
  0x23   :  { %22 = dma.hbm_to_vmem [thread:$0]  %s680_s0, 128, %s20_s8, [#allocation4]  }
  0x24   :  { %s515_s22 = scalar_lea.hbm %s683_s3, 2048 }
  0x25   :  { %p516_p2 = scmp.ne.s32.totalorder %s683_s3, %s515_s22  ;;  %p519_p3 = scmp.lt.u32.totalorder %s515_s22, %s683_s3 }
  0x27   :  { %p521_p4 = pnand %p519_p3, %p516_p2 }
  0x29   :  { %524 = shalt.err (!%p521_p4)
}
  0x2a   :  { %s525_s27 = scalar_lea.vmem %s43_s10, 2048  ;;  %p530_p6 = scmp.lt.s32.totalorder %s43_s10, %s43_s10 }
  0x2b   :  { %p526_p5 = scmp.ne.s32.totalorder %s43_s10, %s525_s27  ;;  %p531_p7 = scmp.lt.s32.totalorder %s525_s27, %s525_s27 }
  0x2d   :  { %p532_p8 = por %p531_p7, %p530_p6 }
  0x2f   :  { %p533_p9 = pnand %p532_p8, %p526_p5 }
  0x31   :  { %536 = shalt.err (!%p533_p9)
}
  0x32   :  { %48 = dma.hbm_to_vmem [thread:$0]  %s683_s3, 2048, %s43_s10, [#allocation7], %s566_s28, %s566_s28, %s567_s29  }
  0x33   :  { %559 = dma.done.wait [#allocation4], 128  }
  0x34   :  { %560 = vsyncadd [#allocation4], 4294967168 }
  0x35   :  { %561 = dma.done.wait [#allocation7], 4096  }
  0x36   :  { %562 = vsyncadd [#allocation7], 4294963200  ;;  %v570_v0 = vmov 0.0|0.0   ;;  %vm571_vm0 = vmmov 0   ;;  %v572_v1 = vmov 0.0   ;;  %v67_v2 = vld [vmem:[#allocation6] sm:$0xff] }
  0x37   :  { %412 = vmatprep.subr.bf16.mxu0 %v570_v0  ;;  %374 = vmatprep.mubr.msk.f32.mxu0 %vm571_vm0, %v572_v1  ;;  %v68_v3 = vld [vmem:[#allocation6 + $0x8] sm:$0xff]  ;;  %v69_v4 = vld [vmem:[#allocation6 + $0x10] sm:$0xff]  ;;  %v70_v6 = vld [vmem:[#allocation6 + $0x18] sm:$0xff]  ;;  %s573_s7 = smov [#allocation9]  }
  0x38   :  { %436 = vmatprep.subr.bf16.mxu1 %v570_v0  ;;  %409 = vmatprep.mubr.msk.f32.mxu1 %vm571_vm0, %v572_v1  ;;  %v413_v5 = vpack.c.bf16 %v68_v3, %v67_v2  ;;  %v416_v7 = vpack.c.bf16 %v70_v6, %v69_v4  ;;  %v71_v8 = vld [vmem:[#allocation6 + $0x20] sm:$0xff]  ;;  %v72_v9 = vld [vmem:[#allocation6 + $0x28] sm:$0xff]  ;;  %v73_v11 = vld [vmem:[#allocation6 + $0x30] sm:$0xff]  ;;  %s297_s8 = sshll.u32 %s573_s7, 4  ;;  %s298_s8 = int_to_ptr.vmem [resolvable:$true] %s297_s8 }
  0x39   :  { %v419_v10 = vpack.c.bf16 %v72_v9, %v71_v8  ;;  %v74_v12 = vld [vmem:[#allocation6 + $0x38] sm:$0xff]  ;;  %v75_v14 = vld [vmem:[#allocation6 + $0x40] sm:$0xff]  ;;  %v76_v15 = vld [vmem:[#allocation6 + $0x48] sm:$0xff]  ;;  %v186_v8 = vlaneseq  ;;  %p542_p11 = scmp.lt.s32.totalorder %s298_s8, %s298_s8 }
  0x3a   :  { %414 = vmatpush3.bf16.msra.mxu0 %v413_v5  ;;  %v422_v13 = vpack.c.bf16 %v74_v12, %v73_v11  ;;  %v425_v16 = vpack.c.bf16 %v76_v15, %v75_v14  ;;  %v77_v17 = vld [vmem:[#allocation6 + $0x50] sm:$0xff]  ;;  %v78_v18 = vld [vmem:[#allocation6 + $0x58] sm:$0xff]  ;;  %v79_v20 = vld [vmem:[#allocation6 + $0x60] sm:$0xff] }
  0x3b   :  { %415 = vmatprep.subr.bf16.mxu0 %v570_v0  ;;  %v428_v19 = vpack.c.bf16 %v78_v18, %v77_v17  ;;  %v80_v21 = vld [vmem:[#allocation6 + $0x68] sm:$0xff]  ;;  %v81_v23 = vld [vmem:[#allocation6 + $0x70] sm:$0xff]  ;;  %v82_v24 = vld [vmem:[#allocation6 + $0x78] sm:$0xff]  ;;  %v187_v9 = vshrl.u32 %v186_v8, 7 }
  0x3c   :  { %v431_v22 = vpack.c.bf16 %v80_v21, %v79_v20  ;;  %v434_v25 = vpack.c.bf16 %v82_v24, %v81_v23  ;;  %v66_v26 = vld [vmem:[#allocation3] sm:$0xff]  ;;  %v197_v27 = vld [vmem:[#allocation8] sm:$0xff]  ;;  %v198_v28 = vld [vmem:[#allocation8 + $0x8] sm:$0xff] }
  0x3d   :  { %v437_v29 = vpack.c.bf16 %v198_v28, %v197_v27  ;;  %v199_v30 = vld [vmem:[#allocation8 + $0x10] sm:$0xff]  ;;  %v200_v31 = vld [vmem:[#allocation8 + $0x18] sm:$0xff]  ;;  %v201_v33 = vld [vmem:[#allocation8 + $0x20] sm:$0xff]  ;;  %v193_v17 = vsub.s32 1, %v187_v9 }
  0x3e   :  { %417 = vmatpush3.bf16.msra.mxu0 %v416_v7  ;;  %v440_v32 = vpack.c.bf16 %v200_v31, %v199_v30  ;;  %v202_v34 = vld [vmem:[#allocation8 + $0x28] sm:$0xff]  ;;  %v203_v36 = vld [vmem:[#allocation8 + $0x30] sm:$0xff]  ;;  %v204_v37 = vld [vmem:[#allocation8 + $0x38] sm:$0xff] }
  0x3f   :  { %418 = vmatprep.subr.bf16.mxu0 %v570_v0  ;;  %438 = vmatpush3.bf16.msra.mxu1 %v437_v29  ;;  %v443_v35 = vpack.c.bf16 %v202_v34, %v201_v33  ;;  %v446_v38 = vpack.c.bf16 %v204_v37, %v203_v36  ;;  %v205_v39 = vld [vmem:[#allocation8 + $0x40] sm:$0xff]  ;;  %v206_v40 = vld [vmem:[#allocation8 + $0x48] sm:$0xff]  ;;  %v207_v42 = vld [vmem:[#allocation8 + $0x50] sm:$0xff] }
  0x40   :  { %439 = vmatprep.subr.bf16.mxu1 %v570_v0  ;;  %v449_v41 = vpack.c.bf16 %v206_v40, %v205_v39  ;;  %v208_v43 = vld [vmem:[#allocation8 + $0x58] sm:$0xff]  ;;  %v209_v45 = vld [vmem:[#allocation8 + $0x60] sm:$0xff]  ;;  %v210_v46 = vld [vmem:[#allocation8 + $0x68] sm:$0xff] }
  0x41   :  { %v452_v44 = vpack.c.bf16 %v208_v43, %v207_v42  ;;  %v211_v47 = vld [vmem:[#allocation8 + $0x70] sm:$0xff]  ;;  %v455_v48 = vpack.c.bf16 %v210_v46, %v209_v45  ;;  %v212_v49 = vld [vmem:[#allocation8 + $0x78] sm:$0xff] }
  0x42   :  { %420 = vmatpush3.bf16.msra.mxu0 %v419_v10  ;;  %v458_v50 = vpack.c.bf16 %v212_v49, %v211_v47  ;;  %v179_v10 = vld [vmem:[%s682_s2] sm:$0x3]  ;;  %s537_s2 = scalar_lea.vmem %s298_s8, 128 }
  0x43   :  { %421 = vmatprep.subr.bf16.mxu0 %v570_v0  ;;  %441 = vmatpush3.bf16.msra.mxu1 %v440_v32  ;;  %v307_v23 = vld [vmem:[%s684_s4] ss:$0 sm:$0xff]  ;;  %p538_p10 = scmp.ne.s32.totalorder %s298_s8, %s537_s2  ;;  %p543_p12 = scmp.lt.s32.totalorder %s537_s2, %s537_s2 }
  0x44   :  { %442 = vmatprep.subr.bf16.mxu1 %v570_v0 }
  0x45   :  { %p544_p13 = por %p543_p12, %p542_p11 }
  0x46   :  { %423 = vmatpush3.bf16.msra.mxu0 %v422_v13  ;;  %v188_v13 = vsub.s32 0, %v187_v9 }
  0x47   :  { %424 = vmatprep.subr.bf16.mxu0 %v570_v0  ;;  %444 = vmatpush3.bf16.msra.mxu1 %v443_v35  ;;  %p545_p0 = pnand %p544_p13, %p538_p10 }
  0x48   :  { %445 = vmatprep.subr.bf16.mxu1 %v570_v0 }
  0x4a   :  { %426 = vmatpush3.bf16.msra.mxu0 %v425_v16 }
  0x4b   :  { %427 = vmatprep.subr.bf16.mxu0 %v570_v0  ;;  %447 = vmatpush3.bf16.msra.mxu1 %v446_v38 }
  0x4c   :  { %448 = vmatprep.subr.bf16.mxu1 %v570_v0 }
  0x4e   :  { %429 = vmatpush3.bf16.msra.mxu0 %v428_v19 }
  0x4f   :  { %430 = vmatprep.subr.bf16.mxu0 %v570_v0  ;;  %450 = vmatpush3.bf16.msra.mxu1 %v449_v41 }
  0x50   :  { %451 = vmatprep.subr.bf16.mxu1 %v570_v0 }
  0x52   :  { %432 = vmatpush3.bf16.msra.mxu0 %v431_v22 }
  0x53   :  { %433 = vmatprep.subr.bf16.mxu0 %v570_v0  ;;  %453 = vmatpush3.bf16.msra.mxu1 %v452_v44 }
  0x54   :  { %454 = vmatprep.subr.bf16.mxu1 %v570_v0 }
  0x56   :  { %435 = vmatpush3.bf16.msra.mxu0 %v434_v25 }
  0x57   :  { %456 = vmatpush3.bf16.msra.mxu1 %v455_v48 }
  0x58   :  { %457 = vmatprep.subr.bf16.mxu1 %v570_v0 }
  0x59   :  { %375 = vmatmul.mubr.f32.vlgmr.msra.gmra.mrb[0].mxu0 %v66_v26 }
  0x5b   :  { %459 = vmatpush3.bf16.msra.mxu1 %v458_v50 }
 0x12c   :  { %v149_v51 = vpop.f32.mrb[0].mxu0 }
 0x12d   :  { %v159_v52 = vrot.slane %v149_v51, 4  ;;  %v165_v53 = vmul.f32 %v149_v51, %v149_v51  ;;  %v376_v54 = vpop.f32.mrb[1].mxu0 }
 0x12f   :  { %v160_v55 = vadd.f32 %v159_v52, %v149_v51  ;;  %v166_v56 = vrot.slane %v165_v53, 4 }
 0x131   :  { %v161_v57 = vrot.slane %v160_v55, 2  ;;  %v167_v58 = vadd.f32 %v166_v56, %v165_v53 }
 0x133   :  { %v162_v59 = vadd.f32 %v161_v57, %v160_v55  ;;  %v168_v60 = vrot.slane %v167_v58, 2 }
 0x135   :  { %v163_v61 = vrot.slane %v162_v59, 1  ;;  %v169_v62 = vadd.f32 %v168_v60, %v167_v58 }
 0x137   :  { %v164_v63 = vadd.f32 %v163_v61, %v162_v59  ;;  %v170_v1 = vrot.slane %v169_v62, 1 }
 0x139   :  { %v171_v2 = vadd.f32 %v170_v1, %v169_v62  ;;  %v172_v3 = vmul.f32 0.25, %v164_v63 }
 0x13b   :  { %v173_v4 = vmul.f32 0.25, %v171_v2  ;;  %v174_v5 = vmul.f32 %v172_v3, %v172_v3 }
 0x13d   :  { %v175_v0 = vsub.f32 %v173_v4, %v174_v5 }
 0x13f   :  { %v176_v6 = vmax.f32 %v175_v0, 0.0 }
 0x141   :  { %v177_v7 = vadd.f32 0.001, %v176_v6 }
 0x143   :  { %469 = vrsqrt.f32 %v177_v7 }
 0x14d   :  { %v470_v11 = vpop.eup %469 }
 0x14e   :  { %v180_v12 = vmul.f32 %v470_v11, %v179_v10 }
 0x150   :  { %v181_v14 = vmul.f32 %v180_v12, %v172_v3  ;;  %v189_v15 = vrot.slane %v180_v12, %v188_v13 }
 0x152   :  { %v183_v16 = vrot.slane %v181_v14, 7  ;;  %v190_v19 = vmul.f32 %v189_v15, %v149_v51 }
 0x154   :  { %v185_v18 = vsub.f32 %v179_v10, %v183_v16 }
 0x156   :  { %v194_v20 = vrot.slane %v185_v18, %v193_v17 }
 0x158   :  { %v195_v21 = vadd.f32 %v194_v20, %v190_v19 }
 0x15a   :  { %v196_v22 = vmax.f32 %v195_v21, 0.0 }
 0x15c   :  { %410 = vmatmul.mubr.f32.vlgmr.msra.gmra.mrb[0].mxu1 %v196_v22 }
 0x22f   :  { %v286_v24 = vpop.f32.mrb[0].mxu1 }
 0x230   :  { %v287_v25 = vadd.f32 %v307_v23, %v286_v24  ;;  %v411_v26 = vpop.f32.mrb[1].mxu1 }
 0x232   :  { %290 = vst [vmem:[#allocation9] sm:$0xff] %v287_v25 }
 0x233   :  { %548 = shalt.err (!%p545_p0)
}
 0x234   :  { %s549_s11 = scalar_lea.hbm %s685_s5, 128 }
 0x235   :  { %p550_p1 = scmp.ne.s32.totalorder %s685_s5, %s549_s11  ;;  %p553_p2 = scmp.lt.u32.totalorder %s549_s11, %s685_s5 }
 0x237   :  { %p555_p3 = pnand %p553_p2, %p550_p1 }
 0x239   :  { %558 = shalt.err (!%p555_p3)
}
 0x23a   :  { %300 = dma.vmem_to_hbm [thread:$0]  %s298_s8, 128, %s685_s5, [#allocation5]  }
 0x23b   :  { %563 = dma.done.wait [#allocation5], 128  }
 0x23c   :  { %564 = vsyncadd [#allocation5], 4294967168 }
 0x23d   :  { %304 = vsyncpa [#allocation4], 1 }
 0x23e   :  { %305 = vsyncpa [#allocation7], 1 }
 0x23f   :  { %306 = vsyncpa [#allocation5], 1 }

</bundles_post_ra>
